<compile_context>
chip_gen: v7x
topology: tpu7x:2x2x1
jax: 0.10.0
libtpu: 0.0.40
codegen_flags: <defaults>
</compile_context>

<pallas_src>
import functools

import jax
import jax.numpy as jnp
from jax.experimental import pallas as pl
from jax.experimental.pallas import tpu as pltpu


def _round_up(x, m):
    return (x + m - 1) // m * m


# ---------------------------------------------------------------------------
# One-time parameter preparation (fuse, transpose, lane-pad).
# ---------------------------------------------------------------------------
def prepare_params(params, category_size, input_size):
    """Fuse/transpose/pad torch-layout weights once, before any step runs."""
    H = params["w_i2h"].shape[0]     # torch layout: [out, in]
    O = params["w_i2o"].shape[0]
    C, I = category_size, input_size
    P = max(128, _round_up(H + O, 128))    # lane-padded stage1 width
    OP = max(128, _round_up(O, 128))       # lane-padded output width

    # Stage 1: fused [i2h | i2o]:  combined @ W1 + b1 -> [hidden' | out1],
    # zero-padded along lanes to P so all loads/stores are unmasked.
    w1 = jnp.concatenate([params["w_i2h"].T, params["w_i2o"].T], axis=1)  # [C+I+H, H+O]
    w1 = jnp.pad(w1, ((0, 0), (0, P - (H + O))))                          # [C+I+H, P]
    b1 = jnp.pad(jnp.concatenate([params["b_i2h"], params["b_i2o"]]),
                 (0, P - (H + O))).reshape(1, P)

    # Stage 2: o2o on [hidden' | out1]; padded rows/cols are zero so the extra
    # lanes contribute nothing (stage1 pad lanes are also exactly zero).
    w2 = jnp.pad(params["w_o2o"].T, ((0, P - (H + O)), (0, OP - O)))      # [P, OP]
    b2 = jnp.pad(params["b_o2o"], (0, OP - O)).reshape(1, OP)

    return {
        # Row-splits of W1 along the concat boundaries (category/input/hidden).
        "w1_c": w1[:C],             # [C, P]
        "w1_i": w1[C:C + I],        # [I, P]
        "w1_h": w1[C + I:],         # [H, P]
        "b1": b1, "w2": w2, "b2": b2,
        "H": H, "O": O, "C": C, "I": I, "P": P, "OP": OP,
    }


# ---------------------------------------------------------------------------
# Single-step kernel (exact equivalent of nn.Module.forward).
# Concat is fused away: three dot-adds against the pre-split W1 row blocks.
# ---------------------------------------------------------------------------
def _step_kernel(cat_ref, x_ref, h_ref, w_c_ref, w_i_ref, w_h_ref, b1_ref,
                 w2_ref, b2_ref, out_ref, hid_ref, *, hidden_size, output_size):
    stage1 = (jnp.dot(cat_ref[...], w_c_ref[...], preferred_element_type=jnp.float32)
              + jnp.dot(x_ref[...], w_i_ref[...], preferred_element_type=jnp.float32)
              + jnp.dot(h_ref[...], w_h_ref[...], preferred_element_type=jnp.float32)
              + b1_ref[...])                                              # [B, P]
    out = (jnp.dot(stage1, w2_ref[...], preferred_element_type=jnp.float32)
           + b2_ref[...])                                                 # [B, OP]
    out_ref[...] = out[:, :output_size].astype(out_ref.dtype)
    hid_ref[...] = stage1[:, :hidden_size].astype(hid_ref.dtype)


def rnn_forward(category, inputs, hidden, prep):
    """One RNN step: (category[B,C], input[B,I], hidden[B,H]) -> (output[B,O], hidden'[B,H])."""
    B = category.shape[0]
    H, O = prep["H"], prep["O"]

    vmem = pl.BlockSpec(memory_space=pltpu.MemorySpace.VMEM)
    out, new_hid = pl.pallas_call(
        functools.partial(_step_kernel, hidden_size=H, output_size=O),
        out_shape=(jax.ShapeDtypeStruct((B, O), jnp.float32),
                   jax.ShapeDtypeStruct((B, H), jnp.float32)),
        in_specs=[vmem] * 9,
        out_specs=(vmem, vmem),
    )(category, inputs, hidden,
      prep["w1_c"], prep["w1_i"], prep["w1_h"], prep["b1"],
      prep["w2"], prep["b2"])
    return out, new_hid


# ---------------------------------------------------------------------------
# Fused time-loop kernel: T steps in ONE pallas_call invocation (no grid).
#   1) hoisted input projection (one matmul for all steps, bias folded in)
#   2) sequential recurrence: only h @ W1_h per step, stage1 rows kept in a
#      VMEM scratch slab (no per-step HBM traffic)
#   3) deferred o2o: one batched matmul + one lane-dense writeback
# ---------------------------------------------------------------------------
def _seq_kernel(x_ref, b1_ref, h0_ref, w_i_ref, w_h_ref, w2_ref, b2_ref,
                out_ref, hN_ref, s1_scr, *, seq_len, batch, hidden_size):
    # (1) Hoisted input projection for all T steps at once: [T*B, I] @ [I, P].
    #     b1_ref already contains (category @ W1_c + b1), tiled across T.
    s1_scr[...] = (
        jnp.dot(x_ref[...], w_i_ref[...], preferred_element_type=jnp.float32)
        + b1_ref[...])

    # (2) Sequential recurrence.  seq_len is static, so this Python loop is
    #     fully unrolled at trace time and every slice is static (zero-cost).
    h = h0_ref[...]
    for t in range(seq_len):
        lo = t * batch
        s1_t = s1_scr[lo:lo + batch, :] + jnp.dot(
            h, w_h_ref[...], preferred_element_type=jnp.float32)          # [B, P]
        s1_scr[lo:lo + batch, :] = s1_t
        h = s1_t[:, :hidden_size]

    # (3) Deferred o2o projection: one [T*B, P] @ [P, OP] matmul and one
    #     lane-dense (128-wide) output store instead of T masked 16-lane stores.
    out_ref[...] = (
        jnp.dot(s1_scr[...], w2_ref[...], preferred_element_type=jnp.float32)
        + b2_ref[...]).astype(out_ref.dtype)

    # Final hidden written exactly once (was a per-step store before).
    hN_ref[...] = h.astype(hN_ref.dtype)


def rnn_forward_sequence(category, input_seq, hidden0, prep):
    """Run T RNN steps with a fixed category in a single kernel invocation.

    category:[B,C], input_seq:[T,B,I], hidden0:[B,H]
      -> (outputs:[T,B,O], final_hidden:[B,H])
    """
    T, B, I = input_seq.shape
    H, O, P, OP = prep["H"], prep["O"], prep["P"], prep["OP"]

    # Category is constant over the sequence: fold its contribution (and b1)
    # into an effective bias once per sequence, tiled across T (tiny, one-time).
    b1_eff = category @ prep["w1_c"] + prep["b1"]                  # [B, P]
    b1_tiled = jnp.tile(b1_eff, (T, 1))                            # [T*B, P]
    x_flat = input_seq.reshape(T * B, I)                           # [T*B, I]

    # TODO(synk): for long sequences / big batches that exceed VMEM, bring back
    # a grid over time-chunks (carrying h via a resident output/scratch).
    vmem = pl.BlockSpec(memory_space=pltpu.MemorySpace.VMEM)
    out_flat, h_final = pl.pallas_call(
        functools.partial(_seq_kernel, seq_len=T, batch=B, hidden_size=H),
        out_shape=(jax.ShapeDtypeStruct((T * B, OP), jnp.float32),
                   jax.ShapeDtypeStruct((B, H), jnp.float32)),
        in_specs=[vmem] * 7,
        out_specs=(vmem, vmem),
        scratch_shapes=[pltpu.VMEM((T * B, P), jnp.float32)],      # stage1 slab
    )(x_flat, b1_tiled, hidden0,
      prep["w1_i"], prep["w1_h"], prep["w2"], prep["b2"])

    out_seq = out_flat[:, :O].reshape(T, B, O)                     # drop lane pad
    return out_seq, h_final


# ---------------------------------------------------------------------------
# Reference (pure JAX, torch-layout weights) and synthetic init.
# ---------------------------------------------------------------------------
def init_params(key, category_size, input_size, hidden_size, output_size):
    ks = jax.random.split(key, 6)
    in1 = category_size + input_size + hidden_size
    in2 = hidden_size + output_size

    def unif(k, shape, fan_in):
        bound = 1.0 / jnp.sqrt(jnp.float32(fan_in))
        return jax.random.uniform(k, shape, jnp.float32, -bound, bound)

    return {
        "w_i2h": unif(ks[0], (hidden_size, in1), in1),
        "b_i2h": unif(ks[1], (hidden_size,), in1),
        "w_i2o": unif(ks[2], (output_size, in1), in1),
        "b_i2o": unif(ks[3], (output_size,), in1),
        "w_o2o": unif(ks[4], (output_size, in2), in2),
        "b_o2o": unif(ks[5], (output_size,), in2),
    }


def rnn_forward_ref(category, inputs, hidden, params):
    combined = jnp.concatenate([category, inputs, hidden], axis=1)
    new_h = combined @ params["w_i2h"].T + params["b_i2h"]
    out1 = combined @ params["w_i2o"].T + params["b_i2o"]
    out = jnp.concatenate([new_h, out1], axis=1) @ params["w_o2o"].T + params["b_o2o"]
    return out, new_h


if __name__ == "__main__":
    B = 2
    category_size = 4
    input_size = 16
    hidden_size = 32
    output_size = 16
    T = 8

    key = jax.random.PRNGKey(0)
    kp, kc, ki, ks = jax.random.split(key, 4)

    params = init_params(kp, category_size, input_size, hidden_size, output_size)
    prep = prepare_params(params, category_size, input_size)   # one-time fusion/pad

    category = jax.random.normal(kc, (B, category_size), jnp.float32)
    inputs = jax.random.normal(ki, (B, input_size), jnp.float32)
    hidden = jnp.zeros((B, hidden_size), jnp.float32)           # init_hidden()

    # --- single step (module forward) ---
    out, new_hid = rnn_forward(category, inputs, hidden, prep)
    out = jax.block_until_ready(out)
    new_hid = jax.block_until_ready(new_hid)
    ref_out, ref_hid = rnn_forward_ref(category, inputs, hidden, params)
    assert jnp.allclose(out, ref_out, atol=1e-5, rtol=1e-5)
    assert jnp.allclose(new_hid, ref_hid, atol=1e-5, rtol=1e-5)

    # --- fused T-step sequence in one kernel invocation ---
    input_seq = jax.random.normal(ks, (T, B, input_size), jnp.float32)
    out_seq, h_final = rnn_forward_sequence(category, input_seq, hidden, prep)
    out_seq = jax.block_until_ready(out_seq)
    h_final = jax.block_until_ready(h_final)

    # reference loop
    h_ref = hidden
    ref_outs = []
    for t in range(T):
        o_t, h_ref = rnn_forward_ref(category, input_seq[t], h_ref, params)
        ref_outs.append(o_t)
    ref_outs = jnp.stack(ref_outs, axis=0)
    assert jnp.allclose(out_seq, ref_outs, atol=1e-5, rtol=1e-5)
    assert jnp.allclose(h_final, h_ref, atol=1e-5, rtol=1e-5)

    print("KERNEL_OK")
</pallas_src>

<mosaic_0001>
module attributes {stable_mosaic.version = 11 : i64} {
  func.func @_step_kernel(%arg0: memref<2x4xf32, #tpu.memory_space<vmem>>, %arg1: memref<2x16xf32, #tpu.memory_space<vmem>>, %arg2: memref<2x32xf32, #tpu.memory_space<vmem>>, %arg3: memref<4x128xf32, #tpu.memory_space<vmem>>, %arg4: memref<16x128xf32, #tpu.memory_space<vmem>>, %arg5: memref<32x128xf32, #tpu.memory_space<vmem>>, %arg6: memref<1x128xf32, #tpu.memory_space<vmem>>, %arg7: memref<128x128xf32, #tpu.memory_space<vmem>>, %arg8: memref<1x128xf32, #tpu.memory_space<vmem>>, %arg9: memref<2x16xf32, #tpu.memory_space<vmem>>, %arg10: memref<2x32xf32, #tpu.memory_space<vmem>>) attributes {dimension_semantics = [], scalar_prefetch = 0 : i64, scratch_operands = 0 : i64, tpu.core_type = #tpu.core_type<tc>} {
    %c0 = arith.constant 0 : index
    %c0_0 = arith.constant 0 : index
    %0 = vector.load %arg0[%c0, %c0_0] : memref<2x4xf32, #tpu.memory_space<vmem>>, vector<2x4xf32>
    %c0_1 = arith.constant 0 : index
    %c0_2 = arith.constant 0 : index
    %1 = vector.load %arg3[%c0_1, %c0_2] : memref<4x128xf32, #tpu.memory_space<vmem>>, vector<4x128xf32>
    %cst = arith.constant dense<0.000000e+00> : vector<2x128xf32>
    %2 = tpu.matmul %0, %1, %cst {dimension_numbers = #tpu.dot_dimension_numbers<[1], [0], [0], [1], [0, 0, 1, 1], [], []>} : vector<2x4xf32>, vector<4x128xf32>, vector<2x128xf32> -> vector<2x128xf32>
    %c0_3 = arith.constant 0 : index
    %c0_4 = arith.constant 0 : index
    %3 = vector.load %arg1[%c0_3, %c0_4] : memref<2x16xf32, #tpu.memory_space<vmem>>, vector<2x16xf32>
    %c0_5 = arith.constant 0 : index
    %c0_6 = arith.constant 0 : index
    %4 = vector.load %arg4[%c0_5, %c0_6] : memref<16x128xf32, #tpu.memory_space<vmem>>, vector<16x128xf32>
    %cst_7 = arith.constant dense<0.000000e+00> : vector<2x128xf32>
    %5 = tpu.matmul %3, %4, %cst_7 {dimension_numbers = #tpu.dot_dimension_numbers<[1], [0], [0], [1], [0, 0, 1, 1], [], []>} : vector<2x16xf32>, vector<16x128xf32>, vector<2x128xf32> -> vector<2x128xf32>
    %6 = arith.addf %2, %5 : vector<2x128xf32>
    %c0_8 = arith.constant 0 : index
    %c0_9 = arith.constant 0 : index
    %7 = vector.load %arg2[%c0_8, %c0_9] : memref<2x32xf32, #tpu.memory_space<vmem>>, vector<2x32xf32>
    %c0_10 = arith.constant 0 : index
    %c0_11 = arith.constant 0 : index
    %8 = vector.load %arg5[%c0_10, %c0_11] : memref<32x128xf32, #tpu.memory_space<vmem>>, vector<32x128xf32>
    %cst_12 = arith.constant dense<0.000000e+00> : vector<2x128xf32>
    %9 = tpu.matmul %7, %8, %cst_12 {dimension_numbers = #tpu.dot_dimension_numbers<[1], [0], [0], [1], [0, 0, 1, 1], [], []>} : vector<2x32xf32>, vector<32x128xf32>, vector<2x128xf32> -> vector<2x128xf32>
    %10 = arith.addf %6, %9 : vector<2x128xf32>
    %c0_13 = arith.constant 0 : index
    %c0_14 = arith.constant 0 : index
    %11 = vector.load %arg6[%c0_13, %c0_14] : memref<1x128xf32, #tpu.memory_space<vmem>>, vector<1x128xf32>
    %12 = vector.broadcast %11 : vector<1x128xf32> to vector<2x128xf32>
    %13 = arith.addf %10, %12 : vector<2x128xf32>
    %c0_15 = arith.constant 0 : index
    %c0_16 = arith.constant 0 : index
    %14 = vector.load %arg7[%c0_15, %c0_16] : memref<128x128xf32, #tpu.memory_space<vmem>>, vector<128x128xf32>
    %cst_17 = arith.constant dense<0.000000e+00> : vector<2x128xf32>
    %15 = tpu.matmul %13, %14, %cst_17 {dimension_numbers = #tpu.dot_dimension_numbers<[1], [0], [0], [1], [0, 0, 1, 1], [], []>} : vector<2x128xf32>, vector<128x128xf32>, vector<2x128xf32> -> vector<2x128xf32>
    %c0_18 = arith.constant 0 : index
    %c0_19 = arith.constant 0 : index
    %16 = vector.load %arg8[%c0_18, %c0_19] : memref<1x128xf32, #tpu.memory_space<vmem>>, vector<1x128xf32>
    %17 = vector.broadcast %16 : vector<1x128xf32> to vector<2x128xf32>
    %18 = arith.addf %15, %17 : vector<2x128xf32>
    %19 = vector.extract_strided_slice %18 {offsets = [0, 0], sizes = [2, 16], strides = [1, 1]} : vector<2x128xf32> to vector<2x16xf32>
    %c0_20 = arith.constant 0 : index
    %c0_21 = arith.constant 0 : index
    %20 = vector.load %arg9[%c0_20, %c0_21] : memref<2x16xf32, #tpu.memory_space<vmem>>, vector<2x16xf32>
    tpu.vector_store %arg9[%c0_20, %c0_21], %19 {strides = array<i32>} : memref<2x16xf32, #tpu.memory_space<vmem>>, vector<2x16xf32>,
    %21 = vector.extract_strided_slice %13 {offsets = [0, 0], sizes = [2, 32], strides = [1, 1]} : vector<2x128xf32> to vector<2x32xf32>
    %c0_22 = arith.constant 0 : index
    %c0_23 = arith.constant 0 : index
    %22 = vector.load %arg10[%c0_22, %c0_23] : memref<2x32xf32, #tpu.memory_space<vmem>>, vector<2x32xf32>
    tpu.vector_store %arg10[%c0_22, %c0_23], %21 {strides = array<i32>} : memref<2x32xf32, #tpu.memory_space<vmem>>, vector<2x32xf32>,
    return
  }
}

</mosaic_0001>

<bundles_post_ra>
// kernel: tpu_custom_call.1
= control target key start
LH: loop header
LB: loop body
LE: loop exit
PB: predicated region body
PF: predicated region fallthrough
CT: control target
= control target key end

     0   :  { %16 = vsyncpa [#allocation3], 0  ;;  %s960_s0 = inlined_call_operand.hbm [shape: f32[2,4], index: 0, kind: input, shape index: {}]   ;;  %s961_s1 = inlined_call_operand.vmem [shape: f32[2,16], index: 1, kind: input, shape index: {}]   ;;  %s962_s2 = inlined_call_operand.hbm [shape: f32[2,32], index: 2, kind: input, shape index: {}]   ;;  %s963_s3 = inlined_call_operand.vmem [shape: f32[4,128], index: 3, kind: input, shape index: {}]   ;;  %s964_s4 = inlined_call_operand.hbm [shape: f32[16,128], index: 4, kind: input, shape index: {}]   ;;  %s965_s5 = inlined_call_operand.hbm [shape: f32[32,128], index: 5, kind: input, shape index: {}]   ;;  %s966_s6 = inlined_call_operand.vmem [shape: f32[1,128], index: 6, kind: input, shape index: {}]   ;;  %s967_s7 = inlined_call_operand.hbm [shape: f32[128,128], index: 7, kind: input, shape index: {}]   ;;  %s968_s8 = inlined_call_operand.vmem [shape: f32[1,128], index: 8, kind: input, shape index: {}]   ;;  %s969_s9 = inlined_call_operand.hbm [shape: f32[2,16], index: 9, kind: output, shape index: {0}]   ;;  %s970_s10 = inlined_call_operand.hbm [shape: f32[2,32], index: 10, kind: output, shape index: {1}]  }
   0x1   :  { %17 = vsyncpa [#allocation6], 0 }
   0x2   :  { %18 = vsyncpa [#allocation9], 0 }
   0x3   :  { %19 = vsyncpa [#allocation4], 0 }
   0x4   :  { %20 = vsyncpa [#allocation13], 0  ;;  %s773_s13 = smov [#allocation5]   ;;  %s609_s17 = scalar_lea.hbm %s962_s2, 32 }
   0x5   :  { %s39_s14 = sshll.u32 %s773_s13, 4  ;;  %p610_p0 = scmp.ne.s32.totalorder %s962_s2, %s609_s17  ;;  %s40_s14 = int_to_ptr.vmem [resolvable:$true] %s39_s14 }
   0x6   :  { %p613_p1 = scmp.lt.u32.totalorder %s609_s17, %s962_s2 }
   0x8   :  { %p615_p2 = pnand %p613_p1, %p610_p0 }
   0xa   :  { %618 = shalt.err (!%p615_p2)
}
   0xb   :  { %s619_s22 = scalar_lea.vmem %s40_s14, 32  ;;  %p624_p4 = scmp.lt.s32.totalorder %s40_s14, %s40_s14 }
   0xc   :  { %p620_p3 = scmp.ne.s32.totalorder %s40_s14, %s619_s22  ;;  %p625_p5 = scmp.lt.s32.totalorder %s619_s22, %s619_s22 }
   0xe   :  { %p626_p6 = por %p625_p5, %p624_p4 }
  0x10   :  { %p627_p7 = pnand %p626_p6, %p620_p3 }
  0x12   :  { %630 = shalt.err (!%p627_p7)
}
  0x13   :  { %42 = dma.hbm_to_vmem [thread:$0]  %s962_s2, 32, %s40_s14, [#allocation6]  }
  0x14   :  { %s774_s25 = smov [#allocation8]   ;;  %s775_s27 = smov [#allocation2]  }
  0x15   :  { %s62_s26 = sshll.u32 %s774_s25, 4  ;;  %s27_s28 = sshll.u32 %s775_s27, 4  ;;  %s63_s26 = int_to_ptr.vmem [resolvable:$true] %s62_s26  ;;  %s28_s28 = int_to_ptr.vmem [resolvable:$true] %s27_s28 }
  0x16   :  { %s631_s11 = scalar_lea.hbm %s965_s5, 512 }
  0x17   :  { %p632_p8 = scmp.ne.s32.totalorder %s965_s5, %s631_s11  ;;  %p635_p9 = scmp.lt.u32.totalorder %s631_s11, %s965_s5 }
  0x19   :  { %p637_p10 = pnand %p635_p9, %p632_p8 }
  0x1b   :  { %640 = shalt.err (!%p637_p10)
}
  0x1c   :  { %s641_s2 = scalar_lea.vmem %s63_s26, 512  ;;  %p646_p12 = scmp.lt.s32.totalorder %s63_s26, %s63_s26 }
  0x1d   :  { %p642_p11 = scmp.ne.s32.totalorder %s63_s26, %s641_s2  ;;  %p647_p13 = scmp.lt.s32.totalorder %s641_s2, %s641_s2 }
  0x1f   :  { %p648_p0 = por %p647_p13, %p646_p12 }
  0x21   :  { %p649_p1 = pnand %p648_p0, %p642_p11 }
  0x23   :  { %652 = shalt.err (!%p649_p1)
}
  0x24   :  { %s776_s14 = smov 128   ;;  %s777_s17 = smov 8  }
  0x25   :  { %68 = dma.hbm_to_vmem [thread:$0]  %s965_s5, 512, %s63_s26, [#allocation9], %s776_s14, %s776_s14, %s777_s17  }
  0x26   :  { %s653_s22 = scalar_lea.hbm %s960_s0, 32 }
  0x27   :  { %p654_p2 = scmp.ne.s32.totalorder %s960_s0, %s653_s22  ;;  %p657_p3 = scmp.lt.u32.totalorder %s653_s22, %s960_s0 }
  0x29   :  { %p659_p4 = pnand %p657_p3, %p654_p2 }
  0x2b   :  { %662 = shalt.err (!%p659_p4)
}
  0x2c   :  { %s663_s29 = scalar_lea.vmem %s28_s28, 32  ;;  %p668_p6 = scmp.lt.s32.totalorder %s28_s28, %s28_s28 }
  0x2d   :  { %p664_p5 = scmp.ne.s32.totalorder %s28_s28, %s663_s29  ;;  %p669_p7 = scmp.lt.s32.totalorder %s663_s29, %s663_s29 }
  0x2f   :  { %p670_p8 = por %p669_p7, %p668_p6 }
  0x31   :  { %p671_p9 = pnand %p670_p8, %p664_p5 }
  0x33   :  { %674 = shalt.err (!%p671_p9)
}
  0x34   :  { %30 = dma.hbm_to_vmem [thread:$0]  %s960_s0, 32, %s28_s28, [#allocation3]  }
  0x35   :  { %s778_s30 = smov [#allocation7]   ;;  %s779_s12 = smov [#allocation10]  }
  0x36   :  { %s50_s11 = sshll.u32 %s778_s30, 4  ;;  %s76_s13 = sshll.u32 %s779_s12, 4  ;;  %s51_s11 = int_to_ptr.vmem [resolvable:$true] %s50_s11  ;;  %s77_s13 = int_to_ptr.vmem [resolvable:$true] %s76_s13 }
  0x37   :  { %s675_s2 = scalar_lea.hbm %s964_s4, 256 }
  0x38   :  { %p676_p10 = scmp.ne.s32.totalorder %s964_s4, %s675_s2  ;;  %p679_p11 = scmp.lt.u32.totalorder %s675_s2, %s964_s4 }
  0x3a   :  { %p681_p12 = pnand %p679_p11, %p676_p10 }
  0x3c   :  { %684 = shalt.err (!%p681_p12)
}
  0x3d   :  { %s685_s0 = scalar_lea.vmem %s51_s11, 256  ;;  %p690_p0 = scmp.lt.s32.totalorder %s51_s11, %s51_s11 }
  0x3e   :  { %p686_p13 = scmp.ne.s32.totalorder %s51_s11, %s685_s0  ;;  %p691_p1 = scmp.lt.s32.totalorder %s685_s0, %s685_s0 }
  0x40   :  { %p692_p2 = por %p691_p1, %p690_p0 }
  0x42   :  { %p693_p3 = pnand %p692_p2, %p686_p13 }
  0x44   :  { %696 = shalt.err (!%p693_p3)
}
  0x45   :  { %56 = dma.hbm_to_vmem [thread:$0]  %s964_s4, 256, %s51_s11, [#allocation6], %s776_s14, %s776_s14, %s777_s17  }
  0x46   :  { %s697_s25 = scalar_lea.hbm %s967_s7, 2048 }
  0x47   :  { %p698_p4 = scmp.ne.s32.totalorder %s967_s7, %s697_s25  ;;  %p701_p5 = scmp.lt.u32.totalorder %s697_s25, %s967_s7 }
  0x49   :  { %p703_p6 = pnand %p701_p5, %p698_p4 }
  0x4b   :  { %706 = shalt.err (!%p703_p6)
}
  0x4c   :  { %s707_s30 = scalar_lea.vmem %s77_s13, 2048  ;;  %p712_p8 = scmp.lt.s32.totalorder %s77_s13, %s77_s13 }
  0x4d   :  { %p708_p7 = scmp.ne.s32.totalorder %s77_s13, %s707_s30  ;;  %p713_p9 = scmp.lt.s32.totalorder %s707_s30, %s707_s30 }
  0x4f   :  { %p714_p10 = por %p713_p9, %p712_p8 }
  0x51   :  { %p715_p11 = pnand %p714_p10, %p708_p7 }
  0x53   :  { %718 = shalt.err (!%p715_p11)
}
  0x54   :  { %82 = dma.hbm_to_vmem [thread:$0]  %s967_s7, 2048, %s77_s13, [#allocation9], %s776_s14, %s776_s14, %s777_s17  }
  0x55   :  { %763 = dma.done.wait [#allocation3], 32  }
  0x56   :  { %764 = vsyncadd [#allocation3], 4294967264 }
  0x57   :  { %765 = dma.done.wait [#allocation6], 288  }
  0x58   :  { %766 = vsyncadd [#allocation6], 4294967008 }
  0x59   :  { %767 = dma.done.wait [#allocation9], 2560  }
  0x5a   :  { %768 = vsyncadd [#allocation9], 4294964736  ;;  %v780_v0 = vmov 0.0|0.0   ;;  %vm781_vm0 = vmmov 0   ;;  %v782_v1 = vmov 0.0   ;;  %v103_v2 = vld [vmem:[#allocation7] sm:$0xff] }
  0x5b   :  { %564 = vmatprep.subr.bf16.mxu1 %v780_v0  ;;  %510 = vmatprep.mubr.msk.f32.mxu1 %vm781_vm0, %v782_v1  ;;  %v104_v3 = vld [vmem:[#allocation7 + $0x8] sm:$0xff]  ;;  %v102_v5 = vld [vmem:[%s961_s1] sm:$0x3]  ;;  %vm105_vm1 = vcmask 130048   ;;  %v346_v9 = vld [vmem:[#allocation10 + $0x8] sm:$0xff]  ;;  %vm183_vm2 = vcmask 1043456  }
  0x5c   :  { %573 = vmatprep.subr.bf16.mxu0 %v780_v0  ;;  %561 = vmatprep.mubr.msk.f32.mxu0 %vm781_vm0, %v782_v1  ;;  %v565_v4 = vpack.c.bf16 %v104_v3, %v103_v2  ;;  %v101_v6 = vld [vmem:[%s963_s3] sm:$0xf]  ;;  %v259_v10 = vld [vmem:[#allocation8 + $0x8] sm:$0xff]  ;;  %v347_v12 = vld [vmem:[#allocation10 + $0x10] sm:$0xff]  ;;  %vm179_vm3 = vcmask 31744   ;;  %vm262_vm4 = vcmask 261120  }
  0x5d   :  { %v258_v7 = vld [vmem:[#allocation8] sm:$0xff]  ;;  %v348_v13 = vld [vmem:[#allocation10 + $0x18] sm:$0xff]  ;;  %v100_v15 = vld [vmem:[#allocation2] sm:$0x3]  ;;  %vm440_vm5 = vcmask 254976   ;;  %s783_s13 = smov [#allocation12]  }
  0x5e   :  { %566 = vmatpush3.bf16.msra.mxu1 %v565_v4  ;;  %v345_v8 = vld [vmem:[#allocation10] sm:$0xff]  ;;  %v577_v14 = vpack.c.bf16 %v348_v13, %v347_v12  ;;  %v568_v16 = vpack.c.bf16 %v259_v10, %v258_v7  ;;  %v350_v18 = vld [vmem:[#allocation10 + $0x28] sm:$0xff]  ;;  %v260_v19 = vld [vmem:[#allocation8 + $0x10] sm:$0xff]  ;;  %s458_s15 = sshll.u32 %s783_s13, 4  ;;  %s459_s15 = int_to_ptr.vmem [resolvable:$true] %s458_s15 }
  0x5f   :  { %513 = vmatprep.subr.mxu1 %v782_v1  ;;  %v574_v11 = vpack.c.bf16 %v346_v9, %v345_v8  ;;  %v349_v17 = vld [vmem:[#allocation10 + $0x20] sm:$0xff]  ;;  %v261_v20 = vld [vmem:[#allocation8 + $0x18] sm:$0xff]  ;;  %v351_v23 = vld [vmem:[#allocation10 + $0x30] sm:$0xff]  ;;  %s719_s16 = scalar_lea.vmem %s459_s15, 32  ;;  %p724_p13 = scmp.lt.s32.totalorder %s459_s15, %s459_s15 }
  0x60   :  { %v580_v21 = vpack.c.bf16 %v350_v18, %v349_v17  ;;  %v571_v22 = vpack.c.bf16 %v261_v20, %v260_v19  ;;  %v352_v24 = vld [vmem:[#allocation10 + $0x38] sm:$0xff]  ;;  %v257_v26 = vld [vmem:[#allocation5] sm:$0x3]  ;;  %v353_v27 = vld [vmem:[#allocation10 + $0x40] sm:$0xff]  ;;  %p720_p12 = scmp.ne.s32.totalorder %s459_s15, %s719_s16  ;;  %p725_p0 = scmp.lt.s32.totalorder %s719_s16, %s719_s16 }
  0x61   :  { %511 = vmatmul.mubr.msk.f32.vlgmr.msra.gmra.mrb[0].mxu1 %vm105_vm1, %v102_v5  ;;  %575 = vmatpush3.bf16.msra.mxu0 %v574_v11  ;;  %v583_v25 = vpack.c.bf16 %v352_v24, %v351_v23  ;;  %v354_v28 = vld [vmem:[#allocation10 + $0x48] sm:$0xff]  ;;  %v355_v30 = vld [vmem:[#allocation10 + $0x50] sm:$0xff]  ;;  %v356_v31 = vld [vmem:[#allocation10 + $0x58] sm:$0xff] }
  0x62   :  { %514 = vmatpush3.msk.msra.mxu1 %vm183_vm2, %v101_v6  ;;  %515 = vmatprep.mubr.msk.f32.mxu1 %vm781_vm0, %v782_v1  ;;  %v586_v29 = vpack.c.bf16 %v354_v28, %v353_v27  ;;  %v589_v32 = vpack.c.bf16 %v356_v31, %v355_v30  ;;  %v357_v33 = vld [vmem:[#allocation10 + $0x60] sm:$0xff]  ;;  %v358_v34 = vld [vmem:[#allocation10 + $0x68] sm:$0xff]  ;;  %v359_v36 = vld [vmem:[#allocation10 + $0x70] sm:$0xff]  ;;  %p726_p1 = por %p725_p0, %p724_p13 }
  0x63   :  { %567 = vmatprep.subr.bf16.mxu1 %v780_v0  ;;  %576 = vmatprep.subr.bf16.mxu0 %v780_v0  ;;  %v592_v35 = vpack.c.bf16 %v358_v34, %v357_v33  ;;  %v360_v37 = vld [vmem:[#allocation10 + $0x78] sm:$0xff]  ;;  %v477_v45 = vld [vmem:[%s966_s6] ss:$0 sm:$0xff] }
  0x64   :  { %v595_v38 = vpack.c.bf16 %v360_v37, %v359_v36  ;;  %p727_p2 = pnand %p726_p1, %p720_p12 }
  0x65   :  { %516 = vmatmul.mubr.msk.f32.vlgmr.msra.gmra.mrb[2].mxu1 %vm179_vm3, %v100_v15  ;;  %578 = vmatpush3.bf16.msra.mxu0 %v577_v14 }
  0x66   :  { %569 = vmatpush3.bf16.msra.mxu1 %v568_v16  ;;  %526 = vmatprep.mubr.msk.f32.mxu1 %vm781_vm0, %v782_v1 }
  0x67   :  { %570 = vmatprep.subr.bf16.mxu1 %v780_v0  ;;  %579 = vmatprep.subr.bf16.mxu0 %v780_v0 }
  0x69   :  { %581 = vmatpush3.bf16.msra.mxu0 %v580_v21 }
  0x6a   :  { %572 = vmatpush3.bf16.msra.mxu1 %v571_v22  ;;  %582 = vmatprep.subr.bf16.mxu0 %v780_v0 }
  0x6d   :  { %527 = vmatmul.mubr.msk.f32.vlgmr.msra.gmra.mrb[4].mxu1 %vm262_vm4, %v257_v26  ;;  %584 = vmatpush3.bf16.msra.mxu0 %v583_v25 }
  0x6e   :  { %585 = vmatprep.subr.bf16.mxu0 %v780_v0 }
  0x71   :  { %587 = vmatpush3.bf16.msra.mxu0 %v586_v29 }
  0x72   :  { %588 = vmatprep.subr.bf16.mxu0 %v780_v0 }
  0x75   :  { %590 = vmatpush3.bf16.msra.mxu0 %v589_v32 }
  0x76   :  { %591 = vmatprep.subr.bf16.mxu0 %v780_v0 }
  0x79   :  { %593 = vmatpush3.bf16.msra.mxu0 %v592_v35 }
  0x7a   :  { %594 = vmatprep.subr.bf16.mxu0 %v780_v0 }
  0x7d   :  { %596 = vmatpush3.bf16.msra.mxu0 %v595_v38 }
 0x134   :  { %v175_v39 = vpop.f32.mrb[0].mxu1 }
 0x135   :  { %v512_v40 = vpop.f32.mrb[1].mxu1 }
 0x138   :  { %v253_v41 = vpop.f32.mrb[2].mxu1 }
 0x139   :  { %v254_v42 = vadd.f32 %v253_v41, %v175_v39  ;;  %v517_v43 = vpop.f32.mrb[3].mxu1 }
 0x140   :  { %v332_v44 = vpop.f32.mrb[4].mxu1 }
 0x141   :  { %v336_v46 = vadd.f32 %v332_v44, %v254_v42  ;;  %v528_v47 = vpop.f32.mrb[5].mxu1 }
 0x143   :  { %v344_v48 = vadd.f32 %v477_v45, %v336_v46 }
 0x145   :  { %562 = vmatmul.mubr.f32.vlgmr.msra.gmra.mrb[0].mxu0 %v344_v48  ;;  %441 = vst.msk [vmem:[#allocation12] sm:$0x3] %vm440_vm5, %v344_v48 }
 0x146   :  { %730 = shalt.err (!%p727_p2)
}
 0x147   :  { %s731_s6 = scalar_lea.hbm %s970_s10, 32 }
 0x148   :  { %p732_p3 = scmp.ne.s32.totalorder %s970_s10, %s731_s6  ;;  %p735_p4 = scmp.lt.u32.totalorder %s731_s6, %s970_s10 }
 0x14a   :  { %p737_p5 = pnand %p735_p4, %p732_p3 }
 0x14c   :  { %740 = shalt.err (!%p737_p5)
}
 0x14d   :  { %461 = dma.vmem_to_hbm [thread:$0]  %s459_s15, 32, %s970_s10, [#allocation13]   ;;  %v478_v49 = vld [vmem:[%s968_s8] ss:$0 sm:$0xff]  ;;  %vm438_vm6 = vcmask 123904  }
 0x14e   :  { %s784_s25 = smov [#allocation11]  }
 0x14f   :  { %s448_s27 = sshll.u32 %s784_s25, 4  ;;  %s449_s27 = int_to_ptr.vmem [resolvable:$true] %s448_s27 }
 0x150   :  { %s741_s29 = scalar_lea.vmem %s449_s27, 32  ;;  %p746_p7 = scmp.lt.s32.totalorder %s449_s27, %s449_s27 }
 0x151   :  { %p742_p6 = scmp.ne.s32.totalorder %s449_s27, %s741_s29  ;;  %p747_p8 = scmp.lt.s32.totalorder %s741_s29, %s741_s29 }
 0x153   :  { %p748_p9 = por %p747_p8, %p746_p7 }
 0x155   :  { %p749_p10 = pnand %p748_p9, %p742_p6 }
 0x218   :  { %v434_v50 = vpop.f32.mrb[0].mxu0 }
 0x219   :  { %v435_v51 = vadd.f32 %v478_v49, %v434_v50  ;;  %v563_v52 = vpop.f32.mrb[1].mxu0 }
 0x21b   :  { %439 = vst.msk [vmem:[#allocation11] sm:$0x3] %vm438_vm6, %v435_v51 }
 0x21c   :  { %752 = shalt.err (!%p749_p10)
}
 0x21d   :  { %s753_s26 = scalar_lea.hbm %s969_s9, 32 }
 0x21e   :  { %p754_p11 = scmp.ne.s32.totalorder %s969_s9, %s753_s26  ;;  %p757_p12 = scmp.lt.u32.totalorder %s753_s26, %s969_s9 }
 0x220   :  { %p759_p13 = pnand %p757_p12, %p754_p11 }
 0x222   :  { %762 = shalt.err (!%p759_p13)
}
 0x223   :  { %451 = dma.vmem_to_hbm [thread:$0]  %s449_s27, 32, %s969_s9, [#allocation4]  }
 0x224   :  { %769 = dma.done.wait [#allocation4], 32  }
 0x225   :  { %770 = vsyncadd [#allocation4], 4294967264 }
 0x226   :  { %771 = dma.done.wait [#allocation13], 32  }
 0x227   :  { %772 = vsyncadd [#allocation13], 4294967264 }
 0x228   :  { %468 = vsyncpa [#allocation3], 1 }
 0x229   :  { %469 = vsyncpa [#allocation6], 1 }
 0x22a   :  { %470 = vsyncpa [#allocation9], 1 }
 0x22b   :  { %471 = vsyncpa [#allocation4], 1 }
 0x22c   :  { %472 = vsyncpa [#allocation13], 1 }

</bundles_post_ra>
